<compile_context>
chip_gen: v6e
topology: v6e:2x2x1
jax: 0.10.0
libtpu: 0.0.40
codegen_flags: <defaults>
</compile_context>

<pallas_src>
import functools

import jax
import jax.numpy as jnp
from jax.experimental import pallas as pl
from jax.experimental.pallas import tpu as pltpu


def _round_up(v, m):
    return ((v + m - 1) // m) * m


def _vmem_capacity_bytes():
    """Physical VMEM of the current TPU generation (conservative fallback)."""
    try:
        info = pltpu.get_tpu_info()
        for attr in ("vmem_capacity_bytes", "vmem_size_bytes"):
            val = getattr(info, attr, None)
            if val:
                return int(val)
    except Exception:
        pass
    return 64 * 1024 * 1024   # v7x physical VMEM; safe lower bound everywhere


def _clip_gram_ce_kernel(a_ref, b_ref, o_ref, acc_ref, *, inv_temp_sq):
    """Grid axis 0 tiles the contraction axis K = L*D.

    a_ref, b_ref : (N, tk)  L2-normalized, flattened feature blocks
    o_ref        : (1, 1)   scalar loss
    acc_ref      : (N, N)   f32 Gram accumulator, S = f1n @ f2n.T
    """
    k = pl.program_id(0)

    @pl.when(k == 0)
    def _init():
        acc_ref[...] = jnp.zeros_like(acc_ref)

    # One lane-dense (N, tk) x (tk, N) MXU contraction per grid step; f32 acc.
    # bf16 inputs feed the MXU natively, f32 inputs take the multi-pass path.
    acc_ref[...] += jax.lax.dot_general(
        a_ref[...], b_ref[...],
        dimension_numbers=(((1,), (1,)), ((), ())),
        preferred_element_type=jnp.float32)

    @pl.when(k == pl.num_programs(0) - 1)
    def _finalize():
        s = acc_ref[...]                                  # (N, N)
        n = s.shape[0]
        inv_n = jnp.float32(1.0 / n)
        it2 = jnp.float32(inv_temp_sq)

        # diag(S) without gathers.
        rid = jax.lax.broadcasted_iota(jnp.int32, (n, n), 0)
        cid = jax.lax.broadcasted_iota(jnp.int32, (n, n), 1)
        eye = (rid == cid).astype(jnp.float32)
        diag = jnp.sum(s * eye, axis=-1, keepdims=True)   # (N, 1)

        # loss1 = CE(S / T / T, arange(N))  -- temperature applied twice (verbatim).
        l1 = s * it2
        m1 = jnp.max(l1, axis=-1, keepdims=True)
        lse1 = jnp.log(jnp.sum(jnp.exp(l1 - m1), axis=-1, keepdims=True)) + m1   # (N, 1)
        loss1 = jnp.sum(lse1 - diag * it2, axis=0, keepdims=True) * inv_n         # (1, 1)

        # loss2 = CE(S.T, arange(N))  -- no temperature (verbatim); rows of S.T
        # are columns of S, i.e. a column (axis=0) softmax of S.
        m2 = jnp.max(s, axis=0, keepdims=True)
        lse2 = jnp.log(jnp.sum(jnp.exp(s - m2), axis=0, keepdims=True)) + m2      # (1, N)
        loss2 = (jnp.sum(lse2, axis=1, keepdims=True)
                 - jnp.sum(diag, axis=0, keepdims=True)) * inv_n                  # (1, 1)

        o_ref[...] = (0.5 * (loss1 + loss2)).astype(o_ref.dtype)


@functools.partial(jax.jit, static_argnames=("temperature", "block_k"))
def clip_loss(features1, features2, temperature=0.07, block_k=None):
    """features1, features2: (N, L, D) -> scalar CLIP loss (matches the PyTorch module)."""
    N, L, D = features1.shape
    assert features2.shape == (N, L, D)

    # F.normalize(dim=2): x / max(||x||_2, 1e-12).  One fused XLA pass, then a
    # free row-major reshape to the lane-dense (N, K = L*D) layout the kernel
    # streams.  With small D (e.g. 32) this is far cheaper than padding every
    # vreg lane row to 128 inside the kernel.
    # TODO(synk): when D % 128 == 0, fuse the normalization back into the kernel
    # on (N, tl, D) blocks to save this extra HBM pass.
    def l2norm_flat(x):
        x32 = x.astype(jnp.float32)
        nrm = jnp.sqrt(jnp.sum(x32 * x32, axis=2, keepdims=True))
        y = x32 / jnp.maximum(nrm, jnp.float32(1e-12))
        # Keep the input dtype so bf16 inputs feed the MXU natively.
        # TODO(synk): on v5e consider casting f32 inputs to bf16 here (f32 acc)
        # for ~3x MXU throughput once the kernel becomes compute-bound.
        return y.astype(x.dtype).reshape(N, L * D)

    a = l2norm_flat(features1)
    b = l2norm_flat(features2)

    K = L * D
    itemsize = jnp.dtype(a.dtype).itemsize
    lane = 128
    sub = 8 * max(1, 4 // itemsize)            # sublane multiple: 8 f32 / 16 bf16
    n_sub = _round_up(N, sub)                  # padded rows of an input block

    # Padding-aware VMEM budget: (N, N) f32 accumulator (+ finalize temporaries)
    # plus 2 inputs x 2 pipeline buffers of (n_sub, tk) each, under a scoped
    # limit derived from the chip generation.
    acc_bytes = _round_up(N, 8) * _round_up(N, lane) * 4
    vmem_cap = _vmem_capacity_bytes()
    vmem_limit = int(min(96 << 20, max(32 << 20, (vmem_cap * 3) // 4)))
    # TODO(synk): for very large N the (N, N) accumulator + finalize working set
    # outgrow VMEM (N ~ 2.9k at 32 MiB); switch to an N-tiled streaming-LSE path.

    K_ceil = _round_up(K, lane)
    if block_k is None:
        headroom = 4 * acc_bytes + (4 << 20)   # finalize temps + pipeline misc
        avail = max(0, vmem_limit - acc_bytes - headroom)
        per_buf = min(8 << 20, max(n_sub * lane * itemsize, avail // 4))
        tk = max(lane, (per_buf // (n_sub * itemsize)) // lane * lane)
        tk = min(tk, K_ceil)
        # Prefer a tk that divides K exactly so no padding / ragged block exists.
        if K % lane == 0:
            t = min(tk, K)
            while t > lane and K % t != 0:
                t -= lane
            if t >= lane and K % t == 0:
                tk = t
    else:
        tk = min(_round_up(max(int(block_k), 1), lane), K_ceil)

    # Zero-pad the contraction axis if tk does not divide K (zeros are exact for
    # a Gram matrix), so the kernel never sees a ragged block and no in-kernel
    # masking is traced.
    Kp = _round_up(K, tk)
    if Kp != K:
        a = jnp.pad(a, ((0, 0), (0, Kp - K)))
        b = jnp.pad(b, ((0, 0), (0, Kp - K)))
    grid = (Kp // tk,)

    kernel = functools.partial(
        _clip_gram_ce_kernel,
        inv_temp_sq=float(1.0 / (temperature * temperature)))

    cost = pl.CostEstimate(
        flops=2 * N * N * Kp + 8 * N * K,
        transcendentals=2 * N * N + 2 * N,
        bytes_accessed=2 * N * Kp * itemsize + 4)

    out = pl.pallas_call(
        kernel,
        out_shape=jax.ShapeDtypeStruct((1, 1), jnp.float32),
        grid_spec=pltpu.PrefetchScalarGridSpec(
            num_scalar_prefetch=0,
            grid=grid,
            in_specs=[
                # TODO(synk): pipeline_mode=pl.Buffered(3) on v7x if DMA is still exposed.
                pl.BlockSpec((N, tk), lambda k: (0, k)),
                pl.BlockSpec((N, tk), lambda k: (0, k)),
            ],
            out_specs=pl.BlockSpec((1, 1), lambda k: (0, 0)),
            scratch_shapes=[pltpu.VMEM((N, N), jnp.float32)],
        ),
        compiler_params=pltpu.CompilerParams(
            # K is a reduction into the shared (N, N) accumulator -> "arbitrary".
            # TODO(synk): on v7x add a leading size-2 "parallel" axis with
            # per-core partial Grams + a tiny combine to use both TensorCores.
            dimension_semantics=("arbitrary",),
            vmem_limit_bytes=vmem_limit),
        cost_estimate=cost,
    )(a, b)

    return out[0, 0]


def _reference(features1, features2, temperature=0.07):
    """Pure-JAX reference reproducing the PyTorch CLIPLoss verbatim."""
    def l2norm(x):
        nrm = jnp.sqrt(jnp.sum(x * x, axis=2, keepdims=True))
        return x / jnp.maximum(nrm, 1e-12)

    a = l2norm(features1).reshape(features1.shape[0], -1)
    b = l2norm(features2).reshape(features2.shape[0], -1)
    logits1 = a @ b.T
    logits2 = b @ a.T
    logits1 = logits1 / temperature
    logits1 = logits1 / temperature     # divided twice, exactly like the original
    n = a.shape[0]
    idx = jnp.arange(n)

    def ce(lg):
        return -jnp.mean(jax.nn.log_softmax(lg, axis=-1)[idx, idx])

    return 0.5 * (ce(logits1) + ce(logits2))


if __name__ == "__main__":
    # Small shapes consistent with the module: batch=4, seq=16, feature dim=32.
    N, L, D = 4, 16, 32
    key = jax.random.PRNGKey(0)
    k1, k2 = jax.random.split(key)
    f1 = jax.random.normal(k1, (N, L, D), dtype=jnp.float32)
    f2 = jax.random.normal(k2, (N, L, D), dtype=jnp.float32)

    loss = clip_loss(f1, f2, temperature=0.07, block_k=256)   # K=512 -> grid of 2 blocks
    loss = jax.block_until_ready(loss)

    ref = _reference(f1, f2, temperature=0.07)
    assert loss.shape == (), loss.shape
    assert bool(jnp.isfinite(loss)), float(loss)
    assert jnp.allclose(loss, ref, rtol=2e-3, atol=2e-3), (float(loss), float(ref))
    print("KERNEL_OK")
</pallas_src>

<mosaic_0001>
module attributes {stable_mosaic.version = 11 : i64} {
  func.func @_clip_gram_ce_kernel(%arg0: i32, %arg1: memref<4x256xf32, #tpu.memory_space<vmem>>, %arg2: memref<4x256xf32, #tpu.memory_space<vmem>>, %arg3: memref<1x1xf32, #tpu.memory_space<vmem>>, %arg4: memref<4x4xf32, #tpu.memory_space<vmem>>) attributes {dimension_semantics = [#tpu.dimension_semantics<arbitrary>], iteration_bounds = array<i64: 2>, scalar_prefetch = 0 : i64, scratch_operands = 1 : i64, tpu.core_type = #tpu.core_type<tc>, window_params = [{transform_indices = @transform_0, window_bounds = array<i64: 4, 256>}, {transform_indices = @transform_1, window_bounds = array<i64: 4, 256>}, {pipeline_mode = #tpu.pipeline_mode<synchronous>, transform_indices = @transform_2, window_bounds = array<i64: 1, 1>}]} {
    %c0_i32 = arith.constant 0 : i32
    %0 = arith.cmpi eq, %arg0, %c0_i32 : i32
    %1 = arith.extui %0 : i1 to i32
    %c0_i32_0 = arith.constant 0 : i32
    %2 = arith.cmpi ne, %1, %c0_i32_0 : i32
    scf.if %2 {
      %cst_9 = arith.constant 0.000000e+00 : f32
      %12 = vector.broadcast %cst_9 : f32 to vector<4x4xf32>
      %c0_10 = arith.constant 0 : index
      %c0_11 = arith.constant 0 : index
      %13 = vector.load %arg4[%c0_10, %c0_11] : memref<4x4xf32, #tpu.memory_space<vmem>>, vector<4x4xf32>
      tpu.vector_store %arg4[%c0_10, %c0_11], %12 {strides = array<i32>} : memref<4x4xf32, #tpu.memory_space<vmem>>, vector<4x4xf32>,
    } else {
    }
    %c0 = arith.constant 0 : index
    %c0_1 = arith.constant 0 : index
    %3 = vector.load %arg4[%c0, %c0_1] : memref<4x4xf32, #tpu.memory_space<vmem>>, vector<4x4xf32>
    %c0_2 = arith.constant 0 : index
    %c0_3 = arith.constant 0 : index
    %4 = vector.load %arg1[%c0_2, %c0_3] : memref<4x256xf32, #tpu.memory_space<vmem>>, vector<4x256xf32>
    %c0_4 = arith.constant 0 : index
    %c0_5 = arith.constant 0 : index
    %5 = vector.load %arg2[%c0_4, %c0_5] : memref<4x256xf32, #tpu.memory_space<vmem>>, vector<4x256xf32>
    %cst = arith.constant dense<0.000000e+00> : vector<4x4xf32>
    %6 = tpu.matmul %4, %5, %cst {dimension_numbers = #tpu.dot_dimension_numbers<[1], [1], [0], [0], [0, 0, 1, 0], [], []>} : vector<4x256xf32>, vector<4x256xf32>, vector<4x4xf32> -> vector<4x4xf32>
    %7 = arith.addf %3, %6 : vector<4x4xf32>
    %c0_6 = arith.constant 0 : index
    %c0_7 = arith.constant 0 : index
    %8 = vector.load %arg4[%c0_6, %c0_7] : memref<4x4xf32, #tpu.memory_space<vmem>>, vector<4x4xf32>
    tpu.vector_store %arg4[%c0_6, %c0_7], %7 {strides = array<i32>} : memref<4x4xf32, #tpu.memory_space<vmem>>, vector<4x4xf32>,
    %c1_i32 = arith.constant 1 : i32
    %9 = arith.cmpi eq, %arg0, %c1_i32 : i32
    %10 = arith.extui %9 : i1 to i32
    %c0_i32_8 = arith.constant 0 : i32
    %11 = arith.cmpi ne, %10, %c0_i32_8 : i32
    scf.if %11 {
      %c0_9 = arith.constant 0 : index
      %c0_10 = arith.constant 0 : index
      %12 = vector.load %arg4[%c0_9, %c0_10] : memref<4x4xf32, #tpu.memory_space<vmem>>, vector<4x4xf32>
      %13 = tpu.iota {dimensions = array<i32: 0>} : vector<4x4xi32>
      %14 = tpu.iota {dimensions = array<i32: 1>} : vector<4x4xi32>
      %15 = arith.cmpi eq, %13, %14 : vector<4x4xi32>
      %16 = arith.extui %15 : vector<4x4xi1> to vector<4x4xi32>
      %17 = arith.sitofp %16 : vector<4x4xi32> to vector<4x4xf32>
      %18 = arith.mulf %12, %17 : vector<4x4xf32>
      %cst_11 = arith.constant dense<0.000000e+00> : vector<4xf32>
      %19 = vector.multi_reduction <add>, %18, %cst_11 [1] : vector<4x4xf32> to vector<4xf32>
      %20 = vector.shape_cast %19 : vector<4xf32> to vector<4x1xf32>
      %cst_12 = arith.constant 204.081635 : f32
      %21 = vector.broadcast %cst_12 : f32 to vector<4x4xf32>
      %22 = arith.mulf %12, %21 : vector<4x4xf32>
      %cst_13 = arith.constant dense<0xFF800000> : vector<4xf32>
      %23 = vector.multi_reduction <maximumf>, %22, %cst_13 [1] : vector<4x4xf32> to vector<4xf32>
      %24 = vector.shape_cast %23 : vector<4xf32> to vector<4x1xf32>
      %25 = vector.broadcast %24 : vector<4x1xf32> to vector<4x4xf32>
      %26 = arith.subf %22, %25 : vector<4x4xf32>
      %27 = math.exp %26 : vector<4x4xf32>
      %cst_14 = arith.constant dense<0.000000e+00> : vector<4xf32>
      %28 = vector.multi_reduction <add>, %27, %cst_14 [1] : vector<4x4xf32> to vector<4xf32>
      %29 = vector.shape_cast %28 : vector<4xf32> to vector<4x1xf32>
      %30 = math.log %29 : vector<4x1xf32>
      %31 = arith.addf %30, %24 : vector<4x1xf32>
      %cst_15 = arith.constant 204.081635 : f32
      %32 = vector.broadcast %cst_15 : f32 to vector<4x1xf32>
      %33 = arith.mulf %20, %32 : vector<4x1xf32>
      %34 = arith.subf %31, %33 : vector<4x1xf32>
      %cst_16 = arith.constant dense<0.000000e+00> : vector<1xf32>
      %35 = vector.multi_reduction <add>, %34, %cst_16 [0] : vector<4x1xf32> to vector<1xf32>
      %36 = vector.shape_cast %35 : vector<1xf32> to vector<1x1xf32>
      %cst_17 = arith.constant 2.500000e-01 : f32
      %37 = vector.broadcast %cst_17 : f32 to vector<1x1xf32>
      %38 = arith.mulf %36, %37 : vector<1x1xf32>
      %cst_18 = arith.constant dense<0xFF800000> : vector<4xf32>
      %39 = vector.multi_reduction <maximumf>, %12, %cst_18 [0] : vector<4x4xf32> to vector<4xf32>
      %40 = vector.shape_cast %39 : vector<4xf32> to vector<1x4xf32>
      %41 = vector.broadcast %40 : vector<1x4xf32> to vector<4x4xf32>
      %42 = arith.subf %12, %41 : vector<4x4xf32>
      %43 = math.exp %42 : vector<4x4xf32>
      %cst_19 = arith.constant dense<0.000000e+00> : vector<4xf32>
      %44 = vector.multi_reduction <add>, %43, %cst_19 [0] : vector<4x4xf32> to vector<4xf32>
      %45 = vector.shape_cast %44 : vector<4xf32> to vector<1x4xf32>
      %46 = math.log %45 : vector<1x4xf32>
      %47 = arith.addf %46, %40 : vector<1x4xf32>
      %cst_20 = arith.constant dense<0.000000e+00> : vector<1xf32>
      %48 = vector.multi_reduction <add>, %47, %cst_20 [1] : vector<1x4xf32> to vector<1xf32>
      %49 = vector.shape_cast %48 : vector<1xf32> to vector<1x1xf32>
      %cst_21 = arith.constant dense<0.000000e+00> : vector<1xf32>
      %50 = vector.multi_reduction <add>, %20, %cst_21 [0] : vector<4x1xf32> to vector<1xf32>
      %51 = vector.shape_cast %50 : vector<1xf32> to vector<1x1xf32>
      %52 = arith.subf %49, %51 : vector<1x1xf32>
      %cst_22 = arith.constant 2.500000e-01 : f32
      %53 = vector.broadcast %cst_22 : f32 to vector<1x1xf32>
      %54 = arith.mulf %52, %53 : vector<1x1xf32>
      %55 = arith.addf %38, %54 : vector<1x1xf32>
      %cst_23 = arith.constant 5.000000e-01 : f32
      %56 = vector.broadcast %cst_23 : f32 to vector<1x1xf32>
      %57 = arith.mulf %56, %55 : vector<1x1xf32>
      %c0_24 = arith.constant 0 : index
      %c0_25 = arith.constant 0 : index
      %58 = vector.load %arg3[%c0_24, %c0_25] : memref<1x1xf32, #tpu.memory_space<vmem>>, vector<1x1xf32>
      tpu.vector_store %arg3[%c0_24, %c0_25], %57 {strides = array<i32>} : memref<1x1xf32, #tpu.memory_space<vmem>>, vector<1x1xf32>,
    } else {
    }
    return
  }
  func.func @transform_0(%arg0: i32) -> (i32, i32) {
    %c0_i32 = arith.constant 0 : i32
    %c0_i32_0 = arith.constant 0 : i32
    return %c0_i32, %arg0 : i32, i32
  }
  func.func @transform_1(%arg0: i32) -> (i32, i32) {
    %c0_i32 = arith.constant 0 : i32
    %c0_i32_0 = arith.constant 0 : i32
    return %c0_i32, %arg0 : i32, i32
  }
  func.func @transform_2(%arg0: i32) -> (i32, i32) {
    %c0_i32 = arith.constant 0 : i32
    %c0_i32_0 = arith.constant 0 : i32
    %c0_i32_1 = arith.constant 0 : i32
    return %c0_i32, %c0_i32_0 : i32, i32
  }
}

</mosaic_0001>

<bundles_post_ra>
// kernel: clip_loss.1
= control target key start
LH: loop header
LB: loop body
LE: loop exit
PB: predicated region body
PF: predicated region fallthrough
CT: control target
= control target key end

     0   :  { %7 = vsyncpa [#allocation4], 0  ;;  %s473_s9 = smov 0   ;;  %s513_s0 = inlined_call_operand.vmem [shape: f32[4,512], index: 0, kind: input, shape index: {}]   ;;  %s514_s1 = inlined_call_operand.vmem [shape: f32[4,512], index: 1, kind: input, shape index: {}]   ;;  %s515_s2 = inlined_call_operand.hbm [shape: f32[1,1], index: 2, kind: output, shape index: {}]  }
   0x1 LB: > { %s479_s10 = sadd.s32 4294967295, %s453_s9   ;;  %p380_p0 = scmp.ge.s32.totalorder %s453_s9, 1  ;;  %s453_s9 = sphi %s473_s9, %s13_s9  }
   0x2   : > { %p120_p1 = scmp.lt.s32.totalorder %s453_s9, 3 }
   0x4   : > { %p121_p2 = pnand %p380_p0, %p120_p1 }
   0x5   : > { %s381_s11 = sshll.u32 (!%p121_p2), %s479_s10, 1  ;;  %p385_p4 = scmp.ne.s32.totalorder (!%p121_p2), %s479_s10, 0 }
   0x6   : > { %124 = sbr.rel (%p121_p2) target bundleno = 581 (0x245), region = 28  ;;  %p143_p3 = scmp.lt.s32.totalorder (!%p121_p2), %s381_s11, 3 }
   0xb   : > { %s517_s11 = smov (!%p143_p3, %s381_s11), 3  ;;  %157 = sbr.rel (%p385_p4) target bundleno = 18 (0x12), region = 32 }
   0xc   : > { %s382_s12 = sshll.u32 %s517_s11, 2 }
   0xd   : > { %s146_s15 = scalar_lea.vmem %s513_s0, %s382_s12  ;;  %s152_s18 = scalar_lea.vmem %s514_s1, %s382_s12 }
  0x10   : > { %vm158_vm0 = vcmask 27648   ;;  %v455_v0 = vmov 0.0  }
  0x11   : > { %159 = vst.msk [vmem:[#allocation2] sm:$0xf] %vm158_vm0, %v455_v0 }
  0x12 PF: > { %v162_v1 = vld [vmem:[%s152_s18] sm:$0xff]  ;;  %vm240_vm1 = vcmask 27648   ;;  %p386_p5 = scmp.ne.s32.totalorder %s479_s10, 1 }
  0x13   : > { %v161_v2 = vld [vmem:[%s146_s15] sm:$0xff]  ;;  %v167_v3 = vcombine.high %v162_v1, %v162_v1 }
  0x14   : > { %v164_v4 = vcombine.high %v161_v2, %v161_v2 }
  0x15   : > { %199 = vmatprep.subr.mxu0 %v167_v3 }
  0x16   : > { %233 = vmatprep.mubr.f32.mxu0 %v164_v4  ;;  %200 = vmatpush1.xpose.msra.mxu0 %v162_v1 }
  0x18   : > { %v160_v5 = vld [vmem:[#allocation2] sm:$0xf] }
  0x19   : > { %234 = vmatmul.mubr.f32.vlgmr.msra.gmra.mxu0 %v161_v2 }
  0xd8   : > { %245 = sbr.rel (%p386_p5) target bundleno = 566 (0x236), region = 36 }
  0xd9   : > { %v235_v6 = vpop.f32.mrf.mxu0 }
  0xda   : > { %v239_v7 = vadd.f32 %v235_v6, %v160_v5 }
  0xdb   : > { %v237_v8 = vpop.f32.mrf.mxu0 }
  0xdc   : > { %241 = vst.msk [vmem:[#allocation2] sm:$0xf] %vm240_vm1, %v239_v7 }
  0xdd   : > { %v247_v23 = vlaneseq  ;;  %v456_v29 = vmov 0.0   ;;  %vm302_vm3 = vcmask 31744   ;;  %vm273_vm4 = vcmask 1043456  }
  0xde   : > { %vm317_vm5 = vcmask 0  }
  0xdf   : > { %v248_v25 = vshrl.u32 %v247_v23, 7  ;;  %v250_v26 = vand.u32 127, %v247_v23 }
  0xe1   : > { %vm251_vm2 = vcmp.eq.s32.totalorder %v248_v25, %v250_v26 }
  0xe2   : > { %v387_v30 = vsel %vm251_vm2, 1.0, %v456_v29 }
  0xe3   : > { %v246_v9 = vld [vmem:[#allocation2] sm:$0xf] }
  0xe4   : > { %v258_v10 = vmul.f32 204.08163, %v246_v9  ;;  %v282_v11 = vsel %vm240_vm1, %v246_v9, -inf  ;;  %v254_v31 = vmul.f32 %v387_v30, %v246_v9 }
  0xe5   : > { %v283_v12 = vrot.slane %v282_v11, 4 }
  0xe6   : > { %v259_v13 = vsel %vm240_vm1, %v258_v10, -inf  ;;  %v255_v33 = vsel %vm240_vm1, %v254_v31, 0.0 }
  0xe7   : > { %260 = vmax.xlane.f32.xlu0 %v259_v13  ;;  %v284_v14 = vmax.f32 %v282_v11, %v283_v12  ;;  %256 = vadd.xlane.f32.xlu1 %v255_v33 }
  0xe9   : > { %v285_v15 = vrot.slane %v284_v14, 2 }
  0xeb   : > { %v286_v16 = vmax.f32 %v284_v14, %v285_v15 }
  0xed   : > { %v287_v17 = vrot.slane %v286_v16, 1 }
  0xef   : > { %v288_v18 = vmax.f32 %v286_v16, %v287_v17 }
  0xf1   : > { %v289_v19 = vsub.f32 %v246_v9, %v288_v18 }
  0xf3   : > { %v290_v20 = vmul.f32 1.442695, %v289_v19 }
  0xf5   : > { %411 = vpow2.f32 %v290_v20 }
 0x102   : > { %v412_v21 = vpop.eup %411 }
 0x103   : > { %v292_v22 = vsel %vm240_vm1, %v412_v21, 0.0 }
 0x104   : > { %v293_v24 = vrot.slane %v292_v22, 4 }
 0x106   : > { %v294_v27 = vadd.f32 %v293_v24, %v292_v22 }
 0x108   : > { %v295_v28 = vrot.slane %v294_v27, 2 }
 0x10a   : > { %v296_v32 = vadd.f32 %v295_v28, %v294_v27 }
 0x10c   : > { %v297_v34 = vrot.slane %v296_v32, 1 }
 0x10e   : > { %v298_v35 = vadd.f32 %v297_v34, %v296_v32 }
 0x110   : > { %413 = vlog2.f32 %v298_v35 }
 0x11d   : > { %v414_v36 = vpop.eup %413 }
 0x11e   : > { %v300_v37 = vmul.f32 0.6931472, %v414_v36 }
 0x120   : > { %v301_v38 = vadd.f32 %v300_v37, %v288_v18 }
 0x122   : > { %v303_v39 = vsel %vm302_vm3, %v301_v38, 0.0 }
 0x123   : > { %304 = vadd.xlane.f32.xlu1 %v303_v39 }
 0x170   : > { %v261_v40 = vpop.xlane.xlu0 %260  ;;  %v257_v46 = vpop.xlane.xlu1 %256 }
 0x171   : > { %v262_v41 = vsub.f32 %v258_v10, %v261_v40  ;;  %v306_v47 = vsel %vm273_vm4, %v257_v46, 0.0  ;;  %v271_v53 = vmul.f32 204.08163, %v257_v46 }
 0x172   : > { %v307_v48 = vrot.slane %v306_v47, 4 }
 0x173   : > { %v263_v42 = vmul.f32 1.442695, %v262_v41 }
 0x174   : > { %v308_v49 = vadd.f32 %v307_v48, %v306_v47 }
 0x175   : > { %415 = vpow2.f32 %v263_v42 }
 0x176   : > { %v309_v51 = vrot.slane %v308_v49, 2 }
 0x178   : > { %v310_v55 = vadd.f32 %v309_v51, %v308_v49 }
 0x17a   : > { %v311_v59 = vrot.slane %v310_v55, 1 }
 0x17c   : > { %v312_v62 = vadd.f32 %v311_v59, %v310_v55 }
 0x182   : > { %v416_v43 = vpop.eup %415 }
 0x183   : > { %v265_v44 = vsel %vm240_vm1, %v416_v43, 0.0 }
 0x184   : > { %266 = vadd.xlane.f32.xlu0 %v265_v44 }
 0x1ac   : > { %v305_v63 = vpop.xlane.xlu1 %304 }
 0x1ad   : > { %v313_v2 = vsub.f32 %v305_v63, %v312_v62 }
 0x1af   : > { %v314_v5 = vmul.f32 0.25, %v313_v2 }
 0x20d   : > { %v267_v45 = vpop.xlane.xlu0 %266 }
 0x20e   : > { %417 = vlog2.f32 %v267_v45 }
 0x21b   : > { %v418_v50 = vpop.eup %417 }
 0x21c   : > { %v269_v52 = vmul.f32 0.6931472, %v418_v50 }
 0x21e   : > { %v270_v54 = vadd.f32 %v269_v52, %v261_v40 }
 0x220   : > { %v272_v56 = vsub.f32 %v270_v54, %v271_v53 }
 0x222   : > { %v274_v57 = vsel %vm273_vm4, %v272_v56, 0.0 }
 0x223   : > { %v275_v58 = vrot.slane %v274_v57, 4 }
 0x225   : > { %v276_v60 = vadd.f32 %v275_v58, %v274_v57 }
 0x227   : > { %v277_v61 = vrot.slane %v276_v60, 2 }
 0x229   : > { %v278_v0 = vadd.f32 %v277_v61, %v276_v60 }
 0x22b   : > { %v279_v1 = vrot.slane %v278_v0, 1 }
 0x22d   : > { %v280_v3 = vadd.f32 %v279_v1, %v278_v0 }
 0x22f   : > { %v281_v4 = vmul.f32 0.25, %v280_v3 }
 0x231   : > { %v315_v6 = vadd.f32 %v314_v5, %v281_v4 }
 0x233   : > { %v316_v7 = vmul.f32 0.5, %v315_v6 }
 0x235   : > { %318 = vst.msk [vmem:[#allocation3] sm:$0x1] %vm317_vm5, %v316_v7 }
 0x236 PF: > { %p396_p6 = scmp.eq.s32.totalorder %s479_s10, 1  ;;  %s457_s19 = smov [#allocation3]  }
 0x237   : > { %s326_s20 = sshll.u32 %s457_s19, 4  ;;  %s327_s20 = int_to_ptr.vmem [resolvable:$true] %s326_s20 }
 0x238   : > { %s419_s21 = scalar_lea.vmem %s327_s20, 16  ;;  %s425_s22 = scalar_lea.vmem %s327_s20, 32 }
 0x239   : > { %p420_p7 = scmp.ne.s32.totalorder %s327_s20, %s419_s21  ;;  %p426_p10 = scmp.lt.s32.totalorder %s327_s20, %s327_s20 }
 0x23a   : > { %p427_p11 = scmp.lt.s32.totalorder %s425_s22, %s419_s21 }
 0x23b   : > { %p421_p8 = pnand %p420_p7, %p396_p6 }
 0x23c   : > { %p428_p12 = por %p427_p11, %p426_p10 }
 0x23d   : > { %p422_p9 = pneg %p421_p8 }
 0x23f   : > { %p429_p13 = pnand %p428_p12, %p422_p9 }
 0x241   : > { %432 = shalt.err (!%p429_p13)
}
 0x242   : > { %393 = dma.vmem_to_hbm [thread:$0]  (%p396_p6), %s327_s20, 16, %s515_s2, [#allocation4]  }
 0x243   : > { %448 = dma.done.wait (%p396_p6), [#allocation4], 16  }
 0x244   : > { %450 = vsyncadd (%p396_p6), [#allocation4], 4294967280 }
 0x245 PF: > { %s13_s9 = sadd.s32 1, %s453_s9  }
 0x246   : > { %p10_p0 = scmp.ge.s32.totalorder %s13_s9, 4  }
 0x248   :  { %12 = sbr.rel (!%p10_p0) target bundleno = 1 (0x1), region = 66 }
 0x24d   :  { %339 = vsyncpa [#allocation4], 1 }
 0x24e   :  { %341 = vsyncpa [#allocation4 + $0x1], 1 }

</bundles_post_ra>
